<compile_context>
chip_gen: v7x
topology: tpu7x:2x2x1
jax: 0.10.0
libtpu: 0.0.40
codegen_flags: <defaults>
</compile_context>

<pallas_src>
import functools
import math

import jax
import jax.numpy as jnp
from jax.experimental import pallas as pl
from jax.experimental.pallas import tpu as pltpu


# ----------------------------------------------------------------------------
# Small helpers.
# ----------------------------------------------------------------------------
def _round_up(n, m):
    return ((n + m - 1) // m) * m


def _pad_rows(a, rows):
    if a.shape[0] == rows:
        return a
    return jnp.pad(a, ((0, rows - a.shape[0]), (0, 0)))


def _pad_cols(a, cols):
    if a.shape[-1] == cols:
        return a
    return jnp.pad(a, ((0, 0), (0, cols - a.shape[-1])))


# ----------------------------------------------------------------------------
# Pallas kernel: fused (seq|freq) head + weight-normed skip MLP + sigmoid.
# ----------------------------------------------------------------------------
def _classifier_kernel(*refs, layer_plan, seq_feat_dim, dot_dtype):
    """One batch tile of the fused Classifier forward.

    refs = (head_in, head_w, head_b, *layer_params, out)
      head_in : (tm, EMB+TFIDF) bf16   concatenated pooled/tfidf features
      head_w  : (EMB+TFIDF, SEQ+FREQ)  block-diagonal fused head weight
      head_b  : (1, SEQ+FREQ) f32
    layer_plan per classifier linear:
      "first": (w, b)            -> x = inputs @ w + b
      "plain": (w, b)            -> x = x @ w + b
      "skip" : (w_x, w_in, b)    -> x = x @ w_x + inputs @ w_in + b
               (w_* pre-scaled by 1/sqrt(2) host-side: no concat in-kernel)
    """
    feat_ref, head_w, head_b = refs[:3]
    out_ref = refs[-1]
    lp = refs[3:-1]

    def mm(a, w_ref):
        w = w_ref[...]
        # Match the weight's dtype (bf16 hidden layers / f32 final), f32 accum.
        return jnp.dot(a.astype(w.dtype), w, preferred_element_type=jnp.float32)

    # Fused external sub-networks: one block-diagonal matmul, then tanh on the
    # seq columns and ReLU on the freq columns via a lane mask.
    h = mm(feat_ref[...], head_w) + head_b[...]
    col = jax.lax.broadcasted_iota(jnp.int32, h.shape, 1)
    inputs_f32 = jnp.where(col < seq_feat_dim, jnp.tanh(h), jnp.maximum(h, 0.0))
    inputs_lp = inputs_f32.astype(dot_dtype)      # cast once, reused below

    def feat_for(w_ref):
        return (inputs_lp
                if jnp.dtype(w_ref.dtype) == jnp.dtype(dot_dtype)
                else inputs_f32)

    x = None
    idx = 0
    nlin = len(layer_plan)
    for l, kind in enumerate(layer_plan):
        if kind == "first":
            x = mm(feat_for(lp[idx]), lp[idx]) + lp[idx + 1][...]
            idx += 2
        elif kind == "skip":
            x = (mm(x, lp[idx])
                 + mm(feat_for(lp[idx + 1]), lp[idx + 1])
                 + lp[idx + 2][...])
            idx += 3
        else:  # plain
            x = mm(x, lp[idx]) + lp[idx + 1][...]
            idx += 2
        if l < nlin - 1:                    # original: l < num_layers - 2
            x = jnp.maximum(x, 0.0)         # ReLU

    out_ref[...] = jax.nn.sigmoid(x).astype(out_ref.dtype)   # F.sigmoid


# ----------------------------------------------------------------------------
# Host-side wrapper: batch grid, VMEM-resident weights, lane-dense output.
# ----------------------------------------------------------------------------
def classifier_pallas(pooled, tfidf, kp, *, tm=512):
    """Run the fused Classifier forward.

    pooled : (B, EMB)   f32  masked-mean-pooled token embeddings
    tfidf  : (B, TFIDF) f32  tf-idf features
    kp     : dict from prepare_kernel_params()
    """
    B = pooled.shape[0]
    # One bf16 input stream instead of two f32 ones (half the input HBM bytes).
    head_in = jnp.concatenate([pooled, tfidf], axis=1).astype(kp["dot_dtype"])

    # Batch tile: big (default 512) for overhead/HBM efficiency, but capped so
    # the grid has >=2 steps whenever the batch allows it (v7x: both TCs work).
    b8 = _round_up(B, 8)
    half = _round_up((b8 + 1) // 2, 8)
    tm_eff = max(8, min(tm, half))
    b_pad = _round_up(b8, tm_eff)
    head_in_p = _pad_rows(head_in, b_pad)

    param_args = [kp["head_w"], kp["head_b"]] + list(kp["flat"])
    args = [head_in_p] + param_args

    grid = (b_pad // tm_eff,)
    in_specs = (
        [pl.BlockSpec((tm_eff, head_in.shape[1]), lambda i: (i, 0))]
        # Parameters: full-array blocks, constant index_map -> VMEM-resident
        # across grid steps (loaded once, not per batch tile).
        + [pl.BlockSpec(a.shape, lambda i: (0, 0)) for a in param_args]
    )
    out_specs = pl.BlockSpec((tm_eff, kp["out_pad"]), lambda i: (i, 0))

    # Advisory cost estimate so XLA can overlap the plain-JAX seq_pool
    # (gather + mean-pool) with this custom call instead of serializing.
    matmul_elems = int(kp["head_w"].size) + sum(
        int(a.size) for a in kp["flat"] if a.shape[0] > 1)
    bytes_accessed = (
        int(head_in_p.size) * jnp.dtype(kp["dot_dtype"]).itemsize
        + sum(int(a.size) * jnp.dtype(a.dtype).itemsize for a in param_args)
        + b_pad * kp["out_pad"] * jnp.dtype(kp["out_dtype"]).itemsize)
    cost = pl.CostEstimate(
        flops=2 * b_pad * matmul_elems,
        transcendentals=b_pad * (kp["head_b"].shape[1] + kp["out_pad"]),
        bytes_accessed=int(bytes_accessed))

    kernel = functools.partial(
        _classifier_kernel, layer_plan=kp["layer_plan"],
        seq_feat_dim=kp["seq_feat_dim"], dot_dtype=kp["dot_dtype"])

    out = pl.pallas_call(
        kernel,
        out_shape=jax.ShapeDtypeStruct((b_pad, kp["out_pad"]), kp["out_dtype"]),
        grid=grid,
        in_specs=in_specs,
        out_specs=out_specs,
        compiler_params=pltpu.CompilerParams(
            dimension_semantics=("parallel",),   # batch axis -> both TCs on v7x
            vmem_limit_bytes=32 * 1024 * 1024,
        ),
        cost_estimate=cost,
    )(*args)
    return out[:B, :kp["out_dim"]].astype(jnp.float32)


# ----------------------------------------------------------------------------
# Parameter construction (deterministic, synthetic) + kernel-friendly prep.
# ----------------------------------------------------------------------------
def make_classifier_params(key, combined_input, combined_dim, num_classes,
                           n_layers, skip_in):
    """Mirror the PyTorch Classifier's linear stack (weight_norm baked in)."""
    dims = [combined_input] + [combined_dim] * n_layers + [num_classes]
    weights, biases = [], []
    for l in range(n_layers - 1):
        out_dim = dims[l + 1] - dims[0] if (l + 1) in skip_in else dims[l + 1]
        in_dim = dims[l]
        key, kv, kg, kb = jax.random.split(key, 4)
        v = jax.random.normal(kv, (out_dim, in_dim), jnp.float32) * 0.1
        g = 1.0 + 0.1 * jax.random.normal(kg, (out_dim, 1), jnp.float32)
        # weight_norm (dim=0): W = g * v / ||v||_row   (baked in for inference)
        w_eff = g * v / jnp.linalg.norm(v, axis=1, keepdims=True)
        b = 0.01 * jax.random.normal(kb, (out_dim,), jnp.float32)
        weights.append(w_eff.T)              # stored as (in_dim, out_dim)
        biases.append(b)
    return weights, biases


def prepare_kernel_params(weights, biases, seq_params, freq_params, *,
                          seq_feat_dim, combined_input, skip_in,
                          dot_dtype=jnp.bfloat16, out_dtype=jnp.float32):
    """Split / pre-scale / pad the weights so the kernel needs no concat."""
    inv_sqrt2 = 1.0 / math.sqrt(2.0)
    num_lin = len(weights)
    out_dim = biases[-1].shape[-1]
    out_pad = _round_up(out_dim, 128)        # lane-dense output store

    # Block-diagonal fused head weight: [pooled | tfidf] @ (seq_w ⊕ freq_w).
    sw = seq_params["w"].astype(jnp.float32)
    fw = freq_params["w"].astype(jnp.float32)
    head_w = jnp.zeros((sw.shape[0] + fw.shape[0], sw.shape[1] + fw.shape[1]),
                       jnp.float32)
    head_w = head_w.at[:sw.shape[0], :sw.shape[1]].set(sw)
    head_w = head_w.at[sw.shape[0]:, sw.shape[1]:].set(fw)
    head_b = jnp.concatenate(
        [seq_params["b"], freq_params["b"]]).reshape(1, -1).astype(jnp.float32)

    layer_plan, flat = [], []
    for l in range(num_lin):
        w = weights[l]
        b = biases[l].reshape(1, -1).astype(jnp.float32)
        last = (l == num_lin - 1)
        # Keep the final layer's matmul in f32 (K is tiny -> nearly free) for
        # tighter numerics; hidden layers in bf16 for full-rate MXU.
        w_dtype = jnp.float32 if last else dot_dtype
        if last:                             # pad final layer columns to 128
            w = _pad_cols(w, out_pad)
            b = _pad_cols(b, out_pad)
        if l == 0:
            # inputs = cat([seq_feat, freq_feat]) is already a single fused
            # feature block in-kernel: single matmul, no split.
            layer_plan.append("first")
            flat += [w.astype(w_dtype), b]
        elif l in skip_in:
            # cat([x, inputs])/sqrt(2) @ W  ->  x@W_x + inputs@W_in
            layer_plan.append("skip")
            x_width = w.shape[0] - combined_input
            flat += [(w[:x_width] * inv_sqrt2).astype(w_dtype),
                     (w[x_width:] * inv_sqrt2).astype(w_dtype), b]
        else:
            layer_plan.append("plain")
            flat += [w.astype(w_dtype), b]

    return {
        "layer_plan": tuple(layer_plan),
        "flat": tuple(flat),
        "out_dim": out_dim,
        "out_pad": out_pad,
        "seq_feat_dim": seq_feat_dim,
        "dot_dtype": dot_dtype,
        "out_dtype": out_dtype,
        "head_w": head_w.astype(dot_dtype),
        "head_b": head_b,
    }


# ----------------------------------------------------------------------------
# Externally supplied sub-network piece that stays in plain JAX.
# ----------------------------------------------------------------------------
def seq_pool(seq_params, input_ids, attention_mask):
    # TODO(synk): data-dependent embedding gather + masked mean-pool has no
    # clean Pallas equivalent at these sizes; kept in plain JAX (its linear+tanh
    # head IS fused into the kernel, and overlaps via the CostEstimate hint).
    emb = seq_params["emb"][input_ids]                     # (B, S, E)
    mask = attention_mask[..., None].astype(jnp.float32)   # (B, S, 1)
    return (emb * mask).sum(axis=1) / jnp.maximum(mask.sum(axis=1), 1.0)


# ----------------------------------------------------------------------------
# Pure-JAX f32 reference (mirrors the original PyTorch forward exactly).
# ----------------------------------------------------------------------------
def reference_forward(seq_params, freq_params, weights, biases, skip_in,
                      input_ids, attention_mask, tfidf):
    pooled = seq_pool(seq_params, input_ids, attention_mask)
    seq_feature = jnp.tanh(pooled @ seq_params["w"] + seq_params["b"])
    freq_feature = jnp.maximum(tfidf @ freq_params["w"] + freq_params["b"], 0.0)
    inputs = jnp.concatenate([seq_feature, freq_feature], axis=1)
    x = inputs
    num_lin = len(weights)
    for l in range(num_lin):
        if l in skip_in:
            x = jnp.concatenate([x, inputs], axis=1) / math.sqrt(2.0)
        x = x @ weights[l] + biases[l]
        if l < num_lin - 1:
            x = jnp.maximum(x, 0.0)
    return jax.nn.sigmoid(x)


# ----------------------------------------------------------------------------
if __name__ == "__main__":
    # Small, deterministic configuration.
    B, S = 2, 8
    VOCAB, EMB = 50, 16
    SEQ_FEAT, FREQ_FEAT, TFIDF = 16, 16, 32
    COMBINED_INPUT = SEQ_FEAT + FREQ_FEAT          # 32
    COMBINED_DIM = 64
    NUM_CLASSES = 4        # present in dims[] but unused by the forward as written
    N_LAYERS = 6
    SKIP_IN = (4,)

    key = jax.random.PRNGKey(0)
    k_ids, k_tfidf, k_emb, k_sw, k_sb, k_fw, k_fb, k_cls = jax.random.split(key, 8)

    # Inputs.
    input_ids = jax.random.randint(k_ids, (B, S), 0, VOCAB, dtype=jnp.int32)
    attention_mask = (jnp.arange(S)[None, :]
                      < jnp.array([S, S // 2])[:, None]).astype(jnp.float32)
    tfidf_features = jax.random.uniform(k_tfidf, (B, TFIDF), jnp.float32)

    # Stand-in sub-network params (external modules in the original code).
    seq_params = {
        "emb": 0.1 * jax.random.normal(k_emb, (VOCAB, EMB), jnp.float32),
        "w": 0.1 * jax.random.normal(k_sw, (EMB, SEQ_FEAT), jnp.float32),
        "b": 0.01 * jax.random.normal(k_sb, (SEQ_FEAT,), jnp.float32),
    }
    freq_params = {
        "w": 0.1 * jax.random.normal(k_fw, (TFIDF, FREQ_FEAT), jnp.float32),
        "b": 0.01 * jax.random.normal(k_fb, (FREQ_FEAT,), jnp.float32),
    }

    weights, biases = make_classifier_params(
        k_cls, COMBINED_INPUT, COMBINED_DIM, NUM_CLASSES, N_LAYERS, SKIP_IN
    )
    kparams = prepare_kernel_params(
        weights, biases, seq_params, freq_params,
        seq_feat_dim=SEQ_FEAT, combined_input=COMBINED_INPUT, skip_in=SKIP_IN,
    )

    @jax.jit
    def run(input_ids, attention_mask, tfidf):
        pooled = seq_pool(seq_params, input_ids, attention_mask)
        return classifier_pallas(pooled, tfidf, kparams)

    prob = jax.block_until_ready(run(input_ids, attention_mask, tfidf_features))

    # Correctness vs f32 reference (bf16 matmul operands -> loose tolerance).
    ref = jax.block_until_ready(reference_forward(
        seq_params, freq_params, weights, biases, SKIP_IN,
        input_ids, attention_mask, tfidf_features))

    assert prob.shape == (B, COMBINED_DIM), prob.shape
    assert bool(jnp.all((prob > 0.0) & (prob < 1.0)))
    assert bool(jnp.max(jnp.abs(prob - ref)) < 5e-2), float(jnp.max(jnp.abs(prob - ref)))
    print("KERNEL_OK")
</pallas_src>

<mosaic_0001>
module attributes {stable_mosaic.version = 11 : i64} {
  func.func @_classifier_kernel(%arg0: i32, %arg1: memref<8x48xbf16, #tpu.memory_space<vmem>>, %arg2: memref<48x32xbf16, #tpu.memory_space<vmem>>, %arg3: memref<1x32xf32, #tpu.memory_space<vmem>>, %arg4: memref<32x64xbf16, #tpu.memory_space<vmem>>, %arg5: memref<1x64xf32, #tpu.memory_space<vmem>>, %arg6: memref<64x64xbf16, #tpu.memory_space<vmem>>, %arg7: memref<1x64xf32, #tpu.memory_space<vmem>>, %arg8: memref<64x64xbf16, #tpu.memory_space<vmem>>, %arg9: memref<1x64xf32, #tpu.memory_space<vmem>>, %arg10: memref<64x32xbf16, #tpu.memory_space<vmem>>, %arg11: memref<1x32xf32, #tpu.memory_space<vmem>>, %arg12: memref<32x128xf32, #tpu.memory_space<vmem>>, %arg13: memref<32x128xf32, #tpu.memory_space<vmem>>, %arg14: memref<1x128xf32, #tpu.memory_space<vmem>>, %arg15: memref<8x128xf32, #tpu.memory_space<vmem>>) attributes {dimension_semantics = [#tpu.dimension_semantics<parallel>], iteration_bounds = array<i64: 1>, scalar_prefetch = 0 : i64, scratch_operands = 0 : i64, tpu.core_type = #tpu.core_type<tc>, window_params = [{transform_indices = @transform_0, window_bounds = array<i64: 8, 48>}, {pipeline_mode = #tpu.pipeline_mode<synchronous>, transform_indices = @transform_1, window_bounds = array<i64: 48, 32>}, {pipeline_mode = #tpu.pipeline_mode<synchronous>, transform_indices = @transform_2, window_bounds = array<i64: 1, 32>}, {pipeline_mode = #tpu.pipeline_mode<synchronous>, transform_indices = @transform_3, window_bounds = array<i64: 32, 64>}, {pipeline_mode = #tpu.pipeline_mode<synchronous>, transform_indices = @transform_4, window_bounds = array<i64: 1, 64>}, {pipeline_mode = #tpu.pipeline_mode<synchronous>, transform_indices = @transform_5, window_bounds = array<i64: 64, 64>}, {pipeline_mode = #tpu.pipeline_mode<synchronous>, transform_indices = @transform_6, window_bounds = array<i64: 1, 64>}, {pipeline_mode = #tpu.pipeline_mode<synchronous>, transform_indices = @transform_7, window_bounds = array<i64: 64, 64>}, {pipeline_mode = #tpu.pipeline_mode<synchronous>, transform_indices = @transform_8, window_bounds = array<i64: 1, 64>}, {pipeline_mode = #tpu.pipeline_mode<synchronous>, transform_indices = @transform_9, window_bounds = array<i64: 64, 32>}, {pipeline_mode = #tpu.pipeline_mode<synchronous>, transform_indices = @transform_10, window_bounds = array<i64: 1, 32>}, {pipeline_mode = #tpu.pipeline_mode<synchronous>, transform_indices = @transform_11, window_bounds = array<i64: 32, 128>}, {pipeline_mode = #tpu.pipeline_mode<synchronous>, transform_indices = @transform_12, window_bounds = array<i64: 32, 128>}, {pipeline_mode = #tpu.pipeline_mode<synchronous>, transform_indices = @transform_13, window_bounds = array<i64: 1, 128>}, {transform_indices = @transform_14, window_bounds = array<i64: 8, 128>}]} {
    %c0 = arith.constant 0 : index
    %c0_0 = arith.constant 0 : index
    %0 = vector.load %arg1[%c0, %c0_0] : memref<8x48xbf16, #tpu.memory_space<vmem>>, vector<8x48xbf16>
    %c0_1 = arith.constant 0 : index
    %c0_2 = arith.constant 0 : index
    %1 = vector.load %arg2[%c0_1, %c0_2] : memref<48x32xbf16, #tpu.memory_space<vmem>>, vector<48x32xbf16>
    %cst = arith.constant dense<0.000000e+00> : vector<8x32xf32>
    %2 = tpu.matmul %0, %1, %cst {dimension_numbers = #tpu.dot_dimension_numbers<[1], [0], [0], [1], [0, 0, 1, 1], [], []>} : vector<8x48xbf16>, vector<48x32xbf16>, vector<8x32xf32> -> vector<8x32xf32>
    %c0_3 = arith.constant 0 : index
    %c0_4 = arith.constant 0 : index
    %3 = vector.load %arg3[%c0_3, %c0_4] : memref<1x32xf32, #tpu.memory_space<vmem>>, vector<1x32xf32>
    %4 = vector.broadcast %3 : vector<1x32xf32> to vector<8x32xf32>
    %5 = arith.addf %2, %4 : vector<8x32xf32>
    %6 = tpu.iota {dimensions = array<i32: 1>} : vector<8x32xi32>
    %c16_i32 = arith.constant 16 : i32
    %7 = vector.broadcast %c16_i32 : i32 to vector<8x32xi32>
    %8 = arith.cmpi slt, %6, %7 : vector<8x32xi32>
    %9 = math.tanh %5 : vector<8x32xf32>
    %cst_5 = arith.constant 0.000000e+00 : f32
    %10 = vector.broadcast %cst_5 : f32 to vector<8x32xf32>
    %11 = arith.maximumf %5, %10 : vector<8x32xf32>
    %12 = arith.select %8, %9, %11 : vector<8x32xi1>, vector<8x32xf32>
    %13 = arith.truncf %12 : vector<8x32xf32> to vector<8x32xbf16>
    %c0_6 = arith.constant 0 : index
    %c0_7 = arith.constant 0 : index
    %14 = vector.load %arg4[%c0_6, %c0_7] : memref<32x64xbf16, #tpu.memory_space<vmem>>, vector<32x64xbf16>
    %cst_8 = arith.constant dense<0.000000e+00> : vector<8x64xf32>
    %15 = tpu.matmul %13, %14, %cst_8 {dimension_numbers = #tpu.dot_dimension_numbers<[1], [0], [0], [1], [0, 0, 1, 1], [], []>} : vector<8x32xbf16>, vector<32x64xbf16>, vector<8x64xf32> -> vector<8x64xf32>
    %c0_9 = arith.constant 0 : index
    %c0_10 = arith.constant 0 : index
    %16 = vector.load %arg5[%c0_9, %c0_10] : memref<1x64xf32, #tpu.memory_space<vmem>>, vector<1x64xf32>
    %17 = vector.broadcast %16 : vector<1x64xf32> to vector<8x64xf32>
    %18 = arith.addf %15, %17 : vector<8x64xf32>
    %cst_11 = arith.constant 0.000000e+00 : f32
    %19 = vector.broadcast %cst_11 : f32 to vector<8x64xf32>
    %20 = arith.maximumf %18, %19 : vector<8x64xf32>
    %c0_12 = arith.constant 0 : index
    %c0_13 = arith.constant 0 : index
    %21 = vector.load %arg6[%c0_12, %c0_13] : memref<64x64xbf16, #tpu.memory_space<vmem>>, vector<64x64xbf16>
    %22 = arith.truncf %20 : vector<8x64xf32> to vector<8x64xbf16>
    %cst_14 = arith.constant dense<0.000000e+00> : vector<8x64xf32>
    %23 = tpu.matmul %22, %21, %cst_14 {dimension_numbers = #tpu.dot_dimension_numbers<[1], [0], [0], [1], [0, 0, 1, 1], [], []>} : vector<8x64xbf16>, vector<64x64xbf16>, vector<8x64xf32> -> vector<8x64xf32>
    %c0_15 = arith.constant 0 : index
    %c0_16 = arith.constant 0 : index
    %24 = vector.load %arg7[%c0_15, %c0_16] : memref<1x64xf32, #tpu.memory_space<vmem>>, vector<1x64xf32>
    %25 = vector.broadcast %24 : vector<1x64xf32> to vector<8x64xf32>
    %26 = arith.addf %23, %25 : vector<8x64xf32>
    %cst_17 = arith.constant 0.000000e+00 : f32
    %27 = vector.broadcast %cst_17 : f32 to vector<8x64xf32>
    %28 = arith.maximumf %26, %27 : vector<8x64xf32>
    %c0_18 = arith.constant 0 : index
    %c0_19 = arith.constant 0 : index
    %29 = vector.load %arg8[%c0_18, %c0_19] : memref<64x64xbf16, #tpu.memory_space<vmem>>, vector<64x64xbf16>
    %30 = arith.truncf %28 : vector<8x64xf32> to vector<8x64xbf16>
    %cst_20 = arith.constant dense<0.000000e+00> : vector<8x64xf32>
    %31 = tpu.matmul %30, %29, %cst_20 {dimension_numbers = #tpu.dot_dimension_numbers<[1], [0], [0], [1], [0, 0, 1, 1], [], []>} : vector<8x64xbf16>, vector<64x64xbf16>, vector<8x64xf32> -> vector<8x64xf32>
    %c0_21 = arith.constant 0 : index
    %c0_22 = arith.constant 0 : index
    %32 = vector.load %arg9[%c0_21, %c0_22] : memref<1x64xf32, #tpu.memory_space<vmem>>, vector<1x64xf32>
    %33 = vector.broadcast %32 : vector<1x64xf32> to vector<8x64xf32>
    %34 = arith.addf %31, %33 : vector<8x64xf32>
    %cst_23 = arith.constant 0.000000e+00 : f32
    %35 = vector.broadcast %cst_23 : f32 to vector<8x64xf32>
    %36 = arith.maximumf %34, %35 : vector<8x64xf32>
    %c0_24 = arith.constant 0 : index
    %c0_25 = arith.constant 0 : index
    %37 = vector.load %arg10[%c0_24, %c0_25] : memref<64x32xbf16, #tpu.memory_space<vmem>>, vector<64x32xbf16>
    %38 = arith.truncf %36 : vector<8x64xf32> to vector<8x64xbf16>
    %cst_26 = arith.constant dense<0.000000e+00> : vector<8x32xf32>
    %39 = tpu.matmul %38, %37, %cst_26 {dimension_numbers = #tpu.dot_dimension_numbers<[1], [0], [0], [1], [0, 0, 1, 1], [], []>} : vector<8x64xbf16>, vector<64x32xbf16>, vector<8x32xf32> -> vector<8x32xf32>
    %c0_27 = arith.constant 0 : index
    %c0_28 = arith.constant 0 : index
    %40 = vector.load %arg11[%c0_27, %c0_28] : memref<1x32xf32, #tpu.memory_space<vmem>>, vector<1x32xf32>
    %41 = vector.broadcast %40 : vector<1x32xf32> to vector<8x32xf32>
    %42 = arith.addf %39, %41 : vector<8x32xf32>
    %cst_29 = arith.constant 0.000000e+00 : f32
    %43 = vector.broadcast %cst_29 : f32 to vector<8x32xf32>
    %44 = arith.maximumf %42, %43 : vector<8x32xf32>
    %c0_30 = arith.constant 0 : index
    %c0_31 = arith.constant 0 : index
    %45 = vector.load %arg12[%c0_30, %c0_31] : memref<32x128xf32, #tpu.memory_space<vmem>>, vector<32x128xf32>
    %cst_32 = arith.constant dense<0.000000e+00> : vector<8x128xf32>
    %46 = tpu.matmul %44, %45, %cst_32 {dimension_numbers = #tpu.dot_dimension_numbers<[1], [0], [0], [1], [0, 0, 1, 1], [], []>} : vector<8x32xf32>, vector<32x128xf32>, vector<8x128xf32> -> vector<8x128xf32>
    %c0_33 = arith.constant 0 : index
    %c0_34 = arith.constant 0 : index
    %47 = vector.load %arg13[%c0_33, %c0_34] : memref<32x128xf32, #tpu.memory_space<vmem>>, vector<32x128xf32>
    %cst_35 = arith.constant dense<0.000000e+00> : vector<8x128xf32>
    %48 = tpu.matmul %12, %47, %cst_35 {dimension_numbers = #tpu.dot_dimension_numbers<[1], [0], [0], [1], [0, 0, 1, 1], [], []>} : vector<8x32xf32>, vector<32x128xf32>, vector<8x128xf32> -> vector<8x128xf32>
    %49 = arith.addf %46, %48 : vector<8x128xf32>
    %c0_36 = arith.constant 0 : index
    %c0_37 = arith.constant 0 : index
    %50 = vector.load %arg14[%c0_36, %c0_37] : memref<1x128xf32, #tpu.memory_space<vmem>>, vector<1x128xf32>
    %51 = vector.broadcast %50 : vector<1x128xf32> to vector<8x128xf32>
    %52 = arith.addf %49, %51 : vector<8x128xf32>
    %53 = arith.negf %52 : vector<8x128xf32>
    %54 = math.exp %53 : vector<8x128xf32>
    %cst_38 = arith.constant 1.000000e+00 : f32
    %55 = vector.broadcast %cst_38 : f32 to vector<8x128xf32>
    %56 = arith.addf %55, %54 : vector<8x128xf32>
    %57 = arith.divf %55, %56 : vector<8x128xf32>
    %c0_39 = arith.constant 0 : index
    %c0_40 = arith.constant 0 : index
    %58 = vector.load %arg15[%c0_39, %c0_40] : memref<8x128xf32, #tpu.memory_space<vmem>>, vector<8x128xf32>
    tpu.vector_store %arg15[%c0_39, %c0_40], %57 {strides = array<i32>} : memref<8x128xf32, #tpu.memory_space<vmem>>, vector<8x128xf32>,
    return
  }
  func.func @transform_0(%arg0: i32) -> (i32, i32) {
    %c0_i32 = arith.constant 0 : i32
    %c0_i32_0 = arith.constant 0 : i32
    return %arg0, %c0_i32 : i32, i32
  }
  func.func @transform_1(%arg0: i32) -> (i32, i32) {
    %c0_i32 = arith.constant 0 : i32
    %c0_i32_0 = arith.constant 0 : i32
    %c0_i32_1 = arith.constant 0 : i32
    return %c0_i32, %c0_i32_0 : i32, i32
  }
  func.func @transform_2(%arg0: i32) -> (i32, i32) {
    %c0_i32 = arith.constant 0 : i32
    %c0_i32_0 = arith.constant 0 : i32
    %c0_i32_1 = arith.constant 0 : i32
    return %c0_i32, %c0_i32_0 : i32, i32
  }
  func.func @transform_3(%arg0: i32) -> (i32, i32) {
    %c0_i32 = arith.constant 0 : i32
    %c0_i32_0 = arith.constant 0 : i32
    %c0_i32_1 = arith.constant 0 : i32
    return %c0_i32, %c0_i32_0 : i32, i32
  }
  func.func @transform_4(%arg0: i32) -> (i32, i32) {
    %c0_i32 = arith.constant 0 : i32
    %c0_i32_0 = arith.constant 0 : i32
    %c0_i32_1 = arith.constant 0 : i32
    return %c0_i32, %c0_i32_0 : i32, i32
  }
  func.func @transform_5(%arg0: i32) -> (i32, i32) {
    %c0_i32 = arith.constant 0 : i32
    %c0_i32_0 = arith.constant 0 : i32
    %c0_i32_1 = arith.constant 0 : i32
    return %c0_i32, %c0_i32_0 : i32, i32
  }
  func.func @transform_6(%arg0: i32) -> (i32, i32) {
    %c0_i32 = arith.constant 0 : i32
    %c0_i32_0 = arith.constant 0 : i32
    %c0_i32_1 = arith.constant 0 : i32
    return %c0_i32, %c0_i32_0 : i32, i32
  }
  func.func @transform_7(%arg0: i32) -> (i32, i32) {
    %c0_i32 = arith.constant 0 : i32
    %c0_i32_0 = arith.constant 0 : i32
    %c0_i32_1 = arith.constant 0 : i32
    return %c0_i32, %c0_i32_0 : i32, i32
  }
  func.func @transform_8(%arg0: i32) -> (i32, i32) {
    %c0_i32 = arith.constant 0 : i32
    %c0_i32_0 = arith.constant 0 : i32
    %c0_i32_1 = arith.constant 0 : i32
    return %c0_i32, %c0_i32_0 : i32, i32
  }
  func.func @transform_9(%arg0: i32) -> (i32, i32) {
    %c0_i32 = arith.constant 0 : i32
    %c0_i32_0 = arith.constant 0 : i32
    %c0_i32_1 = arith.constant 0 : i32
    return %c0_i32, %c0_i32_0 : i32, i32
  }
  func.func @transform_10(%arg0: i32) -> (i32, i32) {
    %c0_i32 = arith.constant 0 : i32
    %c0_i32_0 = arith.constant 0 : i32
    %c0_i32_1 = arith.constant 0 : i32
    return %c0_i32, %c0_i32_0 : i32, i32
  }
  func.func @transform_11(%arg0: i32) -> (i32, i32) {
    %c0_i32 = arith.constant 0 : i32
    %c0_i32_0 = arith.constant 0 : i32
    %c0_i32_1 = arith.constant 0 : i32
    return %c0_i32, %c0_i32_0 : i32, i32
  }
  func.func @transform_12(%arg0: i32) -> (i32, i32) {
    %c0_i32 = arith.constant 0 : i32
    %c0_i32_0 = arith.constant 0 : i32
    %c0_i32_1 = arith.constant 0 : i32
    return %c0_i32, %c0_i32_0 : i32, i32
  }
  func.func @transform_13(%arg0: i32) -> (i32, i32) {
    %c0_i32 = arith.constant 0 : i32
    %c0_i32_0 = arith.constant 0 : i32
    %c0_i32_1 = arith.constant 0 : i32
    return %c0_i32, %c0_i32_0 : i32, i32
  }
  func.func @transform_14(%arg0: i32) -> (i32, i32) {
    %c0_i32 = arith.constant 0 : i32
    %c0_i32_0 = arith.constant 0 : i32
    return %arg0, %c0_i32 : i32, i32
  }
}

</mosaic_0001>

<bundles_post_ra>
// kernel: run.1
= control target key start
LH: loop header
LB: loop body
LE: loop exit
PB: predicated region body
PF: predicated region fallthrough
CT: control target
= control target key end

     0   :  { %v802_v0 = vmov 0.0   ;;  %vm803_vm0 = vmmov 0   ;;  %vm80_vm1 = vcmask 392192   ;;  %v124_v12 = vlaneseq  ;;  %s1021_s1 = inlined_call_operand.vmem [shape: bf16[48,32], index: 1, kind: input, shape index: {}]   ;;  %s1022_s0 = inlined_call_operand.vmem [shape: bf16[8,48], index: 0, kind: input, shape index: {}]   ;;  %s1023_s3 = inlined_call_operand.vmem [shape: bf16[32,64], index: 3, kind: input, shape index: {}]   ;;  %s1024_s5 = inlined_call_operand.vmem [shape: bf16[64,64], index: 5, kind: input, shape index: {}]   ;;  %s1025_s2 = inlined_call_operand.vmem [shape: f32[1,32], index: 2, kind: input, shape index: {}]   ;;  %s1026_s7 = inlined_call_operand.vmem [shape: bf16[64,64], index: 7, kind: input, shape index: {}]   ;;  %s1027_s4 = inlined_call_operand.vmem [shape: f32[1,64], index: 4, kind: input, shape index: {}]   ;;  %s1028_s9 = inlined_call_operand.vmem [shape: bf16[64,32], index: 9, kind: input, shape index: {}]   ;;  %s1029_s6 = inlined_call_operand.vmem [shape: f32[1,64], index: 6, kind: input, shape index: {}]   ;;  %s1030_s12 = inlined_call_operand.vmem [shape: f32[32,128], index: 12, kind: input, shape index: {}]   ;;  %s1031_s11 = inlined_call_operand.vmem [shape: f32[32,128], index: 11, kind: input, shape index: {}]   ;;  %s1032_s8 = inlined_call_operand.vmem [shape: f32[1,64], index: 8, kind: input, shape index: {}]   ;;  %s1033_s10 = inlined_call_operand.vmem [shape: f32[1,32], index: 10, kind: input, shape index: {}]   ;;  %s1034_s13 = inlined_call_operand.vmem [shape: f32[1,128], index: 13, kind: input, shape index: {}]   ;;  %s1035_s14 = inlined_call_operand.vmem [shape: f32[8,128], index: 14, kind: output, shape index: {}]  }
   0x1   :  { %688 = vmatprep.subr.bf16.mxu0 %v802_v0  ;;  %v779_v1 = vld [vmem:[%s1021_s1] sm:$0xff]   ;;  %694 = vmatprep.mubr.msk.bf16.mxu0 %vm803_vm0, %v802_v0  ;;  %v780_v2 = vld [vmem:[%s1021_s1 + $0x8] sm:$0xff]   ;;  %v781_v3 = vld [vmem:[%s1021_s1 + $0x10] sm:$0xff]   ;;  %vm154_vm3 = vcmask 261120   ;;  %vm239_vm4 = vcmask 523264   ;;  %v804_v35 = vmov 0.0|0.0  }
   0x2   :  { %698 = vmatprep.subr.bf16.mxu1 %v802_v0  ;;  %702 = vmatprep.mubr.msk.bf16.mxu1 %vm803_vm0, %v802_v0  ;;  %v48_v4 = vld [vmem:[%s1022_s0] sm:$0xf]  ;;  %v783_v6 = vld [vmem:[%s1023_s3 + $0x8] sm:$0xff]   ;;  %v125_v14 = vand.u32 127, %v124_v12  ;;  %v786_v21 = vld [vmem:[%s1024_s5 + $0x10] sm:$0xff]  }
   0x3   :  { %689 = vmatpush3.bf16.msra.mxu0 %v779_v1  ;;  %v782_v5 = vld [vmem:[%s1023_s3] sm:$0xff]   ;;  %v785_v20 = vld [vmem:[%s1024_s5 + $0x8] sm:$0xff]   ;;  %v787_v22 = vld [vmem:[%s1024_s5 + $0x18] sm:$0xff]  }
   0x4   :  { %690 = vmatprep.subr.bf16.mxu0 %v802_v0  ;;  %699 = vmatpush3.bf16.msra.mxu1 %v782_v5  ;;  %v625_v7 = vld [vmem:[%s1025_s2] ss:$0 sm:$0xff]  ;;  %vm126_vm2 = vcmp.lt.s32.totalorder %v125_v14, 16  ;;  %v789_v24 = vld [vmem:[%s1026_s7 + $0x8] sm:$0xff]   ;;  %v790_v33 = vld [vmem:[%s1026_s7 + $0x10] sm:$0xff]  }
   0x5   :  { %700 = vmatprep.subr.bf16.mxu1 %v802_v0  ;;  %v784_v18 = vld [vmem:[%s1024_s5] sm:$0xff]   ;;  %v791_v34 = vld [vmem:[%s1026_s7 + $0x18] sm:$0xff]   ;;  %v793_v37 = vld [vmem:[%s1028_s9 + $0x8] sm:$0xff]  }
   0x6   :  { %v788_v23 = vld [vmem:[%s1026_s7] sm:$0xff]   ;;  %v457_v43 = vld [vmem:[%s1030_s12 + $0x8] sm:$0xff]  ;;  %v458_v49 = vld [vmem:[%s1030_s12 + $0x10] sm:$0xff] }
   0x7   :  { %691 = vmatpush3.bf16.msra.mxu0 %v780_v2  ;;  %v630_v25 = vld [vmem:[%s1027_s4] ss:$0 sm:$0xff]  ;;  %v459_v50 = vld [vmem:[%s1030_s12 + $0x18] sm:$0xff]  ;;  %v794_v52 = vld [vmem:[%s1028_s9 + $0x10] sm:$0xff]  }
   0x8   :  { %692 = vmatprep.subr.bf16.mxu0 %v802_v0  ;;  %701 = vmatpush3.bf16.msra.mxu1 %v783_v6  ;;  %v792_v36 = vld [vmem:[%s1028_s9] sm:$0xff]   ;;  %v768_v51 = vpack.c.bf16 %v459_v50, %v458_v49  ;;  %v795_v53 = vld [vmem:[%s1028_s9 + $0x18] sm:$0xff]   ;;  %v453_v55 = vld [vmem:[%s1031_s11 + $0x8] sm:$0xff] }
   0x9   :  { %706 = vmatprep.subr.bf16.mxu1 %v802_v0  ;;  %v634_v38 = vld [vmem:[%s1029_s6] ss:$0 sm:$0xff] }
   0xa   :  { %v456_v42 = vld [vmem:[%s1030_s12] sm:$0xff] }
   0xb   :  { %693 = vmatpush3.bf16.msra.mxu0 %v781_v3  ;;  %v765_v47 = vpack.c.bf16 %v457_v43, %v456_v42  ;;  %v452_v54 = vld [vmem:[%s1031_s11] sm:$0xff]  ;;  %v454_v3 = vld [vmem:[%s1031_s11 + $0x10] sm:$0xff] }
   0xc   :  { %718 = vmatprep.subr.bf16.mxu0 %v802_v0  ;;  %v771_v56 = vpack.c.bf16 %v453_v55, %v452_v54  ;;  %v640_v57 = vld [vmem:[%s1032_s8] ss:$0 sm:$0xff] }
   0xd   :  { %v646_v6 = vld [vmem:[%s1033_s10] ss:$0 sm:$0xff] }
   0xe   :  { %695 = vmatmul.mubr.msk.bf16.vlgmr.msra.gmra.mrb[0].mxu0 %vm80_vm1, %v48_v4  ;;  %v455_v4 = vld [vmem:[%s1031_s11 + $0x18] sm:$0xff]  ;;  %v654_v14 = vld [vmem:[%s1034_s13] ss:$0 sm:$0xff] }
   0xf   :  { %726 = vmatprep.mubr.msk.bf16.mxu0 %vm803_vm0, %v802_v0  ;;  %719 = vmatpush3.bf16.msra.mxu0 %v788_v23  ;;  %v774_v5 = vpack.c.bf16 %v455_v4, %v454_v3 }
  0x10   :  { %720 = vmatprep.subr.bf16.mxu0 %v802_v0 }
  0x13   :  { %721 = vmatpush3.bf16.msra.mxu0 %v789_v24 }
  0x14   :  { %722 = vmatprep.subr.bf16.mxu0 %v802_v0 }
  0x17   :  { %723 = vmatpush3.bf16.msra.mxu0 %v790_v33 }
  0x18   :  { %724 = vmatprep.subr.bf16.mxu0 %v802_v0 }
  0x1b   :  { %725 = vmatpush3.bf16.msra.mxu0 %v791_v34 }
  0x1c   :  { %764 = vmatprep.subr.bf16.mxu0 %v804_v35 }
  0xe1   :  { %v118_v8 = vpop.f32.mrb[0].mxu0 }
  0xe2   :  { %v119_v9 = vadd.f32 %v625_v7, %v118_v8  ;;  %v696_v10 = vpop.f32.mrb[1].mxu0 }
  0xe3   :  { %v121_v11 = vpop.f32.mrb[2].mxu0 }
  0xe4   :  { %796 = vtanh.f32 %v119_v9  ;;  %v697_v13 = vpop.f32.mrb[3].mxu0  ;;  %v128_v15 = vmax.f32 %v119_v9, 0.0 }
  0xee   :  { %v797_v16 = vpop.eup %796 }
  0xef   :  { %v914_v17 = vsel %vm126_vm2, %v797_v16, %v128_v15 }
  0xf0   :  { %v130_v19 = vpack.c.bf16 %v914_v17, %v914_v17 }
  0xf2   :  { %703 = vmatmul.mubr.msk.bf16.vlgmr.msra.gmra.mrb[0].mxu1 %vm154_vm3, %v130_v19 }
  0xf3   :  { %707 = vmatpush3.bf16.msra.mxu1 %v784_v18  ;;  %714 = vmatprep.mubr.msk.bf16.mxu1 %vm803_vm0, %v802_v0 }
  0xf4   :  { %708 = vmatprep.subr.bf16.mxu1 %v802_v0 }
  0xf7   :  { %709 = vmatpush3.bf16.msra.mxu1 %v785_v20 }
  0xf8   :  { %710 = vmatprep.subr.bf16.mxu1 %v802_v0 }
  0xfb   :  { %711 = vmatpush3.bf16.msra.mxu1 %v786_v21 }
  0xfc   :  { %712 = vmatprep.subr.bf16.mxu1 %v802_v0 }
  0xff   :  { %713 = vmatpush3.bf16.msra.mxu1 %v787_v22 }
 0x100   :  { %730 = vmatprep.subr.bf16.mxu1 %v802_v0 }
 0x1c5   :  { %v192_v26 = vpop.f32.mrb[0].mxu1 }
 0x1c6   :  { %v193_v27 = vadd.f32 %v630_v25, %v192_v26  ;;  %v704_v28 = vpop.f32.mrb[1].mxu1 }
 0x1c7   :  { %v195_v29 = vpop.f32.mrb[2].mxu1 }
 0x1c8   :  { %v198_v30 = vmax.f32 %v193_v27, 0.0  ;;  %v705_v31 = vpop.f32.mrb[3].mxu1 }
 0x1ca   :  { %v207_v32 = vpack.c.bf16 %v198_v30, %v198_v30 }
 0x1cc   :  { %715 = vmatmul.mubr.msk.bf16.vlgmr.msra.gmra.mrb[4].mxu1 %vm239_vm4, %v207_v32 }
 0x1cd   :  { %738 = vmatprep.mubr.msk.bf16.mxu1 %vm803_vm0, %v802_v0  ;;  %731 = vmatpush3.bf16.msra.mxu1 %v792_v36 }
 0x1ce   :  { %732 = vmatprep.subr.bf16.mxu1 %v802_v0 }
 0x1d1   :  { %733 = vmatpush3.bf16.msra.mxu1 %v793_v37 }
 0x1d2   :  { %734 = vmatprep.subr.bf16.mxu1 %v802_v0 }
 0x1d5   :  { %735 = vmatpush3.bf16.msra.mxu1 %v794_v52 }
 0x1d6   :  { %736 = vmatprep.subr.bf16.mxu1 %v802_v0 }
 0x1d9   :  { %737 = vmatpush3.bf16.msra.mxu1 %v795_v53 }
 0x29f   :  { %v277_v39 = vpop.f32.mrb[4].mxu1 }
 0x2a0   :  { %v278_v40 = vadd.f32 %v634_v38, %v277_v39  ;;  %v716_v41 = vpop.f32.mrb[5].mxu1 }
 0x2a1   :  { %v280_v44 = vpop.f32.mrb[6].mxu1 }
 0x2a2   :  { %v283_v45 = vmax.f32 %v278_v40, 0.0  ;;  %v717_v46 = vpop.f32.mrb[7].mxu1 }
 0x2a4   :  { %v292_v48 = vpack.c.bf16 %v283_v45, %v283_v45 }
 0x2a6   :  { %727 = vmatmul.mubr.msk.bf16.vlgmr.msra.gmra.mrb[4].mxu0 %vm239_vm4, %v292_v48 }
 0x2a7   :  { %766 = vmatpush3.bf16.msra.mxu0 %v765_v47  ;;  %750 = vmatprep.mubr.msk.f32.mxu0 %vm803_vm0, %v802_v0 }
 0x2a8   :  { %767 = vmatprep.subr.bf16.mxu0 %v804_v35 }
 0x2ab   :  { %769 = vmatpush3.bf16.msra.mxu0 %v768_v51 }
 0x2ac   :  { %770 = vmatprep.subr.bf16.mxu0 %v804_v35 }
 0x2ae   :  { %751 = vmatmul.mubr.msk.f32.vlgmr.msra.gmra.mrb[8].mxu0 %vm154_vm3, %v914_v17 }
 0x2af   :  { %761 = vmatprep.mubr.msk.f32.mxu0 %vm803_vm0, %v802_v0  ;;  %772 = vmatpush3.bf16.msra.mxu0 %v771_v56 }
 0x2b0   :  { %773 = vmatprep.subr.bf16.mxu0 %v804_v35 }
 0x2b3   :  { %775 = vmatpush3.bf16.msra.mxu0 %v774_v5 }
 0x379   :  { %v361_v58 = vpop.f32.mrb[4].mxu0 }
 0x37a   :  { %v362_v59 = vadd.f32 %v640_v57, %v361_v58  ;;  %v728_v60 = vpop.f32.mrb[5].mxu0 }
 0x37b   :  { %v364_v61 = vpop.f32.mrb[6].mxu0 }
 0x37c   :  { %v367_v62 = vmax.f32 %v362_v59, 0.0  ;;  %v729_v63 = vpop.f32.mrb[7].mxu0 }
 0x37e   :  { %v376_v0 = vpack.c.bf16 %v367_v62, %v367_v62 }
 0x380   :  { %739 = vmatmul.mubr.msk.bf16.vlgmr.msra.gmra.mrb[8].mxu1 %vm239_vm4, %v376_v0 }
 0x381   :  { %v529_v1 = vpop.f32.mrb[8].mxu0 }
 0x382   :  { %v752_v2 = vpop.f32.mrb[9].mxu0 }
 0x453   :  { %v445_v7 = vpop.f32.mrb[8].mxu1 }
 0x454   :  { %v446_v8 = vadd.f32 %v646_v6, %v445_v7  ;;  %v740_v9 = vpop.f32.mrb[9].mxu1 }
 0x455   :  { %v448_v10 = vpop.f32.mrb[10].mxu1 }
 0x456   :  { %v451_v11 = vmax.f32 %v446_v8, 0.0  ;;  %v741_v12 = vpop.f32.mrb[11].mxu1 }
 0x458   :  { %762 = vmatmul.mubr.msk.f32.vlgmr.msra.gmra.mrb[10].mxu0 %vm154_vm3, %v451_v11 }
 0x52b   :  { %v602_v13 = vpop.f32.mrb[10].mxu0 }
 0x52c   :  { %v603_v15 = vadd.f32 %v602_v13, %v529_v1  ;;  %v763_v16 = vpop.f32.mrb[11].mxu0 }
 0x52e   :  { %v613_v17 = vadd.f32 %v654_v14, %v603_v15 }
 0x530   :  { %v655_v18 = vmul.f32 -1.442695, %v613_v17 }
 0x532   :  { %798 = vpow2.f32 %v655_v18 }
 0x53c   :  { %v799_v19 = vpop.eup %798 }
 0x53d   :  { %v617_v20 = vadd.f32 1.0, %v799_v19 }
 0x53f   :  { %800 = vrcp.f32 %v617_v20 }
 0x549   :  { %v801_v21 = vpop.eup %800 }
 0x54a   :  { %620 = vst [vmem:[%s1035_s14] sm:$0xff] %v801_v21 }

</bundles_post_ra>
